<compile_context>
chip_gen: v7x
topology: tpu7x:2x2x1
jax: 0.10.0
libtpu: 0.0.40
codegen_flags: <defaults>
</compile_context>

<pallas_src>
import math

import jax
import jax.numpy as jnp
from jax import lax
from jax.experimental import pallas as pl
from jax.experimental.pallas import tpu as pltpu


# ----------------------------------------------------------------------------
# Pallas kernels
# ----------------------------------------------------------------------------
def _scores_kernel(x_ref, w_ref, o_ref):
    """sigmoid(w . x) with all three Linear layers pre-folded.

    x_ref : (D, tile_n) transposed node features [h | centralities | 1]
    w_ref : (D, 1) folded projection weights (biases baked into the ones row)
    o_ref : (1, tile_n) lane-dense scores
    """
    s = jnp.sum(x_ref[...] * w_ref[...], axis=0, keepdims=True)  # VPU mul + reduce
    o_ref[...] = jax.nn.sigmoid(s)


def _graph_power_small_kernel(a_rows_ref, a_full_ref, o_ref):
    """Row-block path (N <= _SMALL_N): o_rows = float((A + A@A + A@A@A) != 0).

    a_rows_ref : (rb, N) row block of the bf16 0/1 adjacency
    a_full_ref : (N, N)  full bf16 0/1 adjacency (resident, constant index map)
    o_ref      : (rb, N) bf16 0/1 reachability rows
    Grid over row blocks is "parallel" -> sharded across TensorCores on v7x.
    """
    ar = a_rows_ref[...]
    af = a_full_ref[...]
    a2 = jnp.dot(ar, af, preferred_element_type=jnp.float32)
    a2b = (a2 != 0).astype(jnp.bfloat16)                         # clamp — exact
    a3 = jnp.dot(a2b, af, preferred_element_type=jnp.float32)
    o_ref[...] = ((ar != 0) | (a2 != 0) | (a3 != 0)).astype(o_ref.dtype)


def _a2_bool_kernel(a_ik_ref, a_kj_ref, o_ref, acc_ref):
    # tiled: o = (a @ a != 0) as bf16 0/1
    @pl.when(pl.program_id(2) == 0)
    def _():
        acc_ref[...] = jnp.zeros_like(acc_ref)

    acc_ref[...] += jnp.dot(a_ik_ref[...], a_kj_ref[...],
                            preferred_element_type=jnp.float32)

    @pl.when(pl.program_id(2) == pl.num_programs(2) - 1)
    def _():
        o_ref[...] = (acc_ref[...] != 0).astype(o_ref.dtype)


def _a3_or_kernel(a2b_ik_ref, a_kj_ref, a_ij_ref, a2b_ij_ref, o_ref, acc_ref):
    # tiled: o = bf16(a | a2b | (a2b @ a != 0))   (fused finalize)
    @pl.when(pl.program_id(2) == 0)
    def _():
        acc_ref[...] = jnp.zeros_like(acc_ref)

    acc_ref[...] += jnp.dot(a2b_ik_ref[...], a_kj_ref[...],
                            preferred_element_type=jnp.float32)

    @pl.when(pl.program_id(2) == pl.num_programs(2) - 1)
    def _():
        reach = (a_ij_ref[...] != 0) | (a2b_ij_ref[...] != 0) | (acc_ref[...] != 0)
        o_ref[...] = reach.astype(o_ref.dtype)


def _norm_g_kernel(g_ref, deg_ref, o_ref):
    """torch: degrees = sum(g, 1); g = g / degrees
    (degrees broadcasts over the LAST dim: column j divided by row-sum j)

    g_ref   : (kk, kk) bf16 0/1 pooled reachability
    deg_ref : (1, kk) f32 row sums (accumulated in f32 by the wrapper)
    o_ref   : (kk, kk) f32 normalized graph
    A vector reciprocal + broadcast multiply replaces kk^2 f32 divides.
    Division by a zero degree yields inf/nan — matches torch's behavior.
    """
    inv = 1.0 / deg_ref[...]                       # (1, kk) exact vector divide
    o_ref[...] = g_ref[...].astype(jnp.float32) * inv


def _floyd_warshall_kernel(d0_ref, o_ref, d_scr):
    """All-pairs shortest hop distances with the whole matrix resident in VMEM.

    d0_ref : (N, N) f32 initial distances (0 diag, 1 edges, 1e9 otherwise)
    o_ref  : (N, N) f32 final distances
    d_scr  : (N, N) f32 working buffer
    Pivot row/column are extracted with iota + select + reduce (no dynamic
    lane indexing), so every op is a plain VPU/XLU primitive.
    """
    n = d_scr.shape[0]
    d_scr[...] = d0_ref[...]
    lane_idx = lax.broadcasted_iota(jnp.int32, (1, n), 1)   # hoisted once
    sub_idx = lax.broadcasted_iota(jnp.int32, (n, 1), 0)
    big = jnp.float32(1e9)

    def body(kk, carry):
        d = d_scr[...]
        # d[:, kk] and d[kk, :]; all entries are <= 1e9 so the masked min is exact
        col = jnp.min(jnp.where(lane_idx == kk, d, big), axis=1, keepdims=True)
        row = jnp.min(jnp.where(sub_idx == kk, d, big), axis=0, keepdims=True)
        d_scr[...] = jnp.minimum(d, col + row)
        return carry

    lax.fori_loop(0, n, body, 0)
    o_ref[...] = d_scr[...]


# ----------------------------------------------------------------------------
# Graph power wrapper:  bf16((A + A@A + A@A@A) != 0),  A = (g != 0)
# ----------------------------------------------------------------------------
_SMALL_N = 512   # whole-array / row-block path up to here (~6 MiB live at 512)
_TILE = 512      # tiled path: 512x512 bf16/f32 tiles ≈ 6 MiB live — inside the
                 # default scoped VMEM on v5e (16 MiB) and v6e/v7x (32 MiB);
                 # 512-aligned for the v6e/v7x 2x256^2 MXU and the v5e 4x128^2
                 # MXU, and large enough that per-grid-step overhead (~0.35 us)
                 # no longer dominates the ~0.3-1.3 us of MXU work per step.


def _graph_power(g):
    """Returns the boolean 3-hop reachability as bf16 0/1.

    For the tiled path the result is left zero-PADDED to a tile multiple —
    padded rows/cols are all-zero so every power is unchanged in the top-left
    (n, n) block, and the downstream gathers only use indices < n.
    """
    n = g.shape[0]
    a = (g != 0).astype(jnp.bfloat16)        # 0/1 pattern only — bf16 is exact

    if n <= _SMALL_N:
        # Row-block split (parallel grid -> both TCs on v7x) when the block
        # stays a multiple of 16 sublanes (bf16-friendly); else one full block.
        if n >= 256 and n % 64 == 0:
            nblk = 4
        elif n % 32 == 0:
            nblk = 2
        else:
            nblk = 1
        rb = n // nblk
        return pl.pallas_call(
            _graph_power_small_kernel,
            out_shape=jax.ShapeDtypeStruct((n, n), jnp.bfloat16),
            grid=(nblk,),
            in_specs=[pl.BlockSpec((rb, n), lambda i: (i, 0)),
                      pl.BlockSpec((n, n), lambda i: (0, 0))],
            out_specs=pl.BlockSpec((rb, n), lambda i: (i, 0)),
            compiler_params=pltpu.CompilerParams(
                dimension_semantics=("parallel",)),
        )(a, a)

    # Tiled path. Zero-pad to a tile multiple (exact, see docstring).
    t = _TILE
    npad = pl.cdiv(n, t) * t
    if npad != n:
        a = jnp.pad(a, ((0, npad - n), (0, npad - n)))
    grid = (npad // t, npad // t, npad // t)
    params = pltpu.CompilerParams(
        dimension_semantics=("parallel", "parallel", "arbitrary"))

    a2b = pl.pallas_call(
        _a2_bool_kernel,
        out_shape=jax.ShapeDtypeStruct((npad, npad), jnp.bfloat16),
        grid=grid,
        in_specs=[pl.BlockSpec((t, t), lambda i, j, k: (i, k)),
                  pl.BlockSpec((t, t), lambda i, j, k: (k, j))],
        out_specs=pl.BlockSpec((t, t), lambda i, j, k: (i, j)),
        scratch_shapes=[pltpu.VMEM((t, t), jnp.float32)],
        compiler_params=params,
    )(a, a)

    out = pl.pallas_call(
        _a3_or_kernel,
        out_shape=jax.ShapeDtypeStruct((npad, npad), jnp.bfloat16),
        grid=grid,
        in_specs=[pl.BlockSpec((t, t), lambda i, j, k: (i, k)),   # a2b (reduction lhs)
                  pl.BlockSpec((t, t), lambda i, j, k: (k, j)),   # a   (reduction rhs)
                  pl.BlockSpec((t, t), lambda i, j, k: (i, j)),   # a   (final OR)
                  pl.BlockSpec((t, t), lambda i, j, k: (i, j))],  # a2b (final OR)
        out_specs=pl.BlockSpec((t, t), lambda i, j, k: (i, j)),
        scratch_shapes=[pltpu.VMEM((t, t), jnp.float32)],
        compiler_params=params,
    )(a2b, a, a, a2b)

    # No [:n, :n] slice: gathers downstream use idx < n on the padded array.
    return out


# ----------------------------------------------------------------------------
# Floyd–Warshall (all-pairs hop distances) — VMEM-resident Pallas kernel
# ----------------------------------------------------------------------------
_FW_MAX_N = 1024   # 3 x (N,N) f32 + temporaries fits comfortably in 48 MiB


def _all_pairs_distances(d0):
    n = d0.shape[0]
    if n <= _FW_MAX_N:
        return pl.pallas_call(
            _floyd_warshall_kernel,
            out_shape=jax.ShapeDtypeStruct((n, n), jnp.float32),
            grid=(1,),
            in_specs=[pl.BlockSpec((n, n), lambda i: (0, 0))],
            out_specs=pl.BlockSpec((n, n), lambda i: (0, 0)),
            scratch_shapes=[pltpu.VMEM((n, n), jnp.float32)],
            compiler_params=pltpu.CompilerParams(
                dimension_semantics=("arbitrary",),
                vmem_limit_bytes=48 << 20),
        )(d0)

    # TODO(synk): blocked (panel) min-plus Floyd–Warshall Pallas kernel for
    # N > _FW_MAX_N; plain-JAX fallback streams ~8N^3 bytes of HBM.
    def body(kk, d):
        col = lax.dynamic_slice_in_dim(d, kk, 1, axis=1)   # (n, 1)
        row = lax.dynamic_slice_in_dim(d, kk, 1, axis=0)   # (1, n)
        return jnp.minimum(d, col + row)

    return lax.fori_loop(0, n, body, d0)


# ----------------------------------------------------------------------------
# Centrality features (glue: the reference runs networkx on the host CPU)
# ----------------------------------------------------------------------------
def _centralities(g):
    n = g.shape[0]
    a = (g != 0).astype(jnp.float32)
    deg = jnp.sum(a, axis=1)
    degree_c = deg / (n - 1)

    # unweighted all-pairs hop distances (Floyd–Warshall, min-plus)
    big = jnp.float32(1e9)
    eye = jnp.eye(n, dtype=bool)
    d0 = jnp.where(a > 0, 1.0, big)
    d0 = jnp.where(eye, 0.0, d0)

    d = _all_pairs_distances(d0)

    closeness = (n - 1) / jnp.sum(d, axis=1)
    harmonic = jnp.sum(jnp.where(eye, 0.0, 1.0 / jnp.maximum(d, 1e-9)), axis=1)

    evals, evecs = jnp.linalg.eigh(a)                      # subgraph centrality
    subgraph_c = jnp.sum((evecs ** 2) * jnp.exp(evals)[None, :], axis=1)

    # TODO(synk): betweenness/load centrality (Brandes' algorithm) has no clean
    # dense Pallas/JAX equivalent here; those two columns are filled with zeros.
    betweenness = jnp.zeros((n,), jnp.float32)
    load_c = jnp.zeros((n,), jnp.float32)

    return jnp.stack(
        [closeness, degree_c, betweenness, load_c, subgraph_c, harmonic],
        axis=1).astype(jnp.float32)


# ----------------------------------------------------------------------------
# Scores (folded Linear layers) — lane-tiled for large N
# ----------------------------------------------------------------------------
_SCORE_TILE = 1024


def _scores(feats_t, w_col):
    d, n = feats_t.shape
    tile = n if n <= _SCORE_TILE else _SCORE_TILE
    npad = pl.cdiv(n, tile) * tile
    if npad != n:
        feats_t = jnp.pad(feats_t, ((0, 0), (0, npad - n)))
    out = pl.pallas_call(
        _scores_kernel,
        out_shape=jax.ShapeDtypeStruct((1, npad), jnp.float32),
        grid=(npad // tile,),
        in_specs=[pl.BlockSpec((d, tile), lambda i: (0, i)),
                  pl.BlockSpec((d, 1), lambda i: (0, 0))],
        out_specs=pl.BlockSpec((1, tile), lambda i: (0, i)),
        compiler_params=pltpu.CompilerParams(
            dimension_semantics=("parallel",)),
    )(feats_t, w_col)
    return out[0, :n]


# ----------------------------------------------------------------------------
# Pool module
# ----------------------------------------------------------------------------
class Pool:
    CENTRALITIES_NUM = 6

    def __init__(self, k, in_dim, p, key):
        self.k = k
        # TODO(synk): nn.Dropout(p) is treated as inference-mode identity.
        del p

        def linear_init(key, fan_in, fan_out):
            kw, kb = jax.random.split(key)
            bound = 1.0 / math.sqrt(fan_in)
            w = jax.random.uniform(kw, (fan_in, fan_out), jnp.float32,
                                   -bound, bound)
            b = jax.random.uniform(kb, (1, fan_out), jnp.float32,
                                   -bound, bound)
            return w, b

        kf, ks, kfin = jax.random.split(key, 3)
        self.wf, self.bf = linear_init(kf, in_dim, 1)                 # feature_proj
        self.ws, self.bs = linear_init(ks, self.CENTRALITIES_NUM, 1)  # structure_proj
        self.wfin, self.bfin = linear_init(kfin, 2, 1)                # final_proj

    def _folded_score_weights(self):
        # final_proj(cat([feature_proj(h), structure_proj(c)], 1))
        #   == h @ (wf*wfin0) + c @ (ws*wfin1) + (bf*wfin0 + bs*wfin1 + bfin)
        w_h = self.wf[:, 0] * self.wfin[0, 0]
        w_c = self.ws[:, 0] * self.wfin[1, 0]
        b = (self.bf[0, 0] * self.wfin[0, 0]
             + self.bs[0, 0] * self.wfin[1, 0]
             + self.bfin[0, 0])
        return jnp.concatenate([w_h, w_c, b[None]], axis=0)[:, None]   # (D, 1)

    def __call__(self, g, h):
        n = g.shape[0]

        c = _centralities(g)                                           # (N, 6)

        # ---- scores: one fused kernel, lane-dense (1, N) output ------------
        feats_t = jnp.concatenate(
            [h, c, jnp.ones((n, 1), jnp.float32)], axis=1).T           # (D, N)
        w_col = self._folded_score_weights()                           # (D, 1)
        scores = _scores(feats_t, w_col)                               # (N,)

        # ---- graph power expansion (bf16 0/1, possibly padded) --------------
        un_g = _graph_power(g)

        kk = max(2, int(self.k * n))
        values, idx = lax.top_k(scores, kk)                            # glue

        # new_h = h[idx, :] * values[:, None]  (plain JAX — fuses with gather)
        new_h = jnp.take(h, idx, axis=0) * values[:, None]

        # ---- norm_g on the pooled subgraph ----------------------------------
        ug_sel = jnp.take(jnp.take(un_g, idx, axis=0), idx, axis=1)    # (kk, kk) bf16
        # row-sum degrees accumulated in f32 (bf16 counts only exact to 256);
        # passed as a (1, kk) vector — no second (kk, kk) transposed stream.
        deg = jnp.sum(ug_sel.astype(jnp.float32), axis=1)[None, :]     # (1, kk)
        new_g = pl.pallas_call(
            _norm_g_kernel,
            out_shape=jax.ShapeDtypeStruct((kk, kk), jnp.float32),
            grid=(1,),
            in_specs=[pl.BlockSpec((kk, kk), lambda i: (0, 0)),
                      pl.BlockSpec((1, kk), lambda i: (0, 0))],
            out_specs=pl.BlockSpec((kk, kk), lambda i: (0, 0)),
            compiler_params=pltpu.CompilerParams(
                dimension_semantics=("arbitrary",)),
        )(ug_sel, deg)

        return new_g, new_h, idx


# ----------------------------------------------------------------------------
if __name__ == "__main__":
    key = jax.random.PRNGKey(0)
    kg, kh, kp = jax.random.split(key, 3)

    n, in_dim = 16, 32

    # symmetric 0/1 adjacency, zero diagonal, ring added to guarantee connectivity
    r = jax.random.uniform(kg, (n, n))
    a = (((r + r.T) * 0.5) > 0.6).astype(jnp.float32)
    ar = jnp.arange(n)
    ring = jnp.zeros((n, n), jnp.float32).at[ar, (ar + 1) % n].set(1.0)
    a = jnp.clip(a + ring + ring.T, 0.0, 1.0)
    a = a * (1.0 - jnp.eye(n, dtype=jnp.float32))

    h = jax.random.normal(kh, (n, in_dim), jnp.float32)

    pool = Pool(k=0.5, in_dim=in_dim, p=0.0, key=kp)
    g_out, h_out, idx_out = pool(a, h)
    jax.block_until_ready((g_out, h_out, idx_out))

    assert g_out.shape == (8, 8)
    assert h_out.shape == (8, in_dim)
    assert idx_out.shape == (8,)
    print("KERNEL_OK")
</pallas_src>

<mosaic_0001>
module attributes {stable_mosaic.version = 11 : i64} {
  func.func @_floyd_warshall_kernel(%arg0: i32, %arg1: memref<16x16xf32, #tpu.memory_space<vmem>>, %arg2: memref<16x16xf32, #tpu.memory_space<vmem>>, %arg3: memref<16x16xf32, #tpu.memory_space<vmem>>) attributes {dimension_semantics = [#tpu.dimension_semantics<arbitrary>], iteration_bounds = array<i64: 1>, scalar_prefetch = 0 : i64, scratch_operands = 1 : i64, tpu.core_type = #tpu.core_type<tc>, window_params = [{pipeline_mode = #tpu.pipeline_mode<synchronous>, transform_indices = @transform_0, window_bounds = array<i64: 16, 16>}, {pipeline_mode = #tpu.pipeline_mode<synchronous>, transform_indices = @transform_1, window_bounds = array<i64: 16, 16>}]} {
    %c0 = arith.constant 0 : index
    %c0_0 = arith.constant 0 : index
    %0 = vector.load %arg1[%c0, %c0_0] : memref<16x16xf32, #tpu.memory_space<vmem>>, vector<16x16xf32>
    %c0_1 = arith.constant 0 : index
    %c0_2 = arith.constant 0 : index
    %1 = vector.load %arg3[%c0_1, %c0_2] : memref<16x16xf32, #tpu.memory_space<vmem>>, vector<16x16xf32>
    tpu.vector_store %arg3[%c0_1, %c0_2], %0 {strides = array<i32>} : memref<16x16xf32, #tpu.memory_space<vmem>>, vector<16x16xf32>,
    %2 = tpu.iota {dimensions = array<i32: 1>} : vector<1x16xi32>
    %3 = tpu.iota {dimensions = array<i32: 0>} : vector<16x1xi32>
    %cst = arith.constant 1.000000e+09 : f32
    %c0_i32 = arith.constant 0 : i32
    %c16_i32 = arith.constant 16 : i32
    %4 = arith.addi %c0_i32, %c16_i32 : i32
    %c1_i32 = arith.constant 1 : i32
    scf.for %arg4 = %c0_i32 to %4 step %c1_i32  : i32 {
      %c0_8 = arith.constant 0 : index
      %c0_9 = arith.constant 0 : index
      %7 = vector.load %arg3[%c0_8, %c0_9] : memref<16x16xf32, #tpu.memory_space<vmem>>, vector<16x16xf32>
      %8 = vector.broadcast %arg4 : i32 to vector<1x16xi32>
      %9 = arith.cmpi eq, %2, %8 : vector<1x16xi32>
      %10 = vector.shape_cast %9 : vector<1x16xi1> to vector<1x16xi1>
      %11 = vector.broadcast %10 : vector<1x16xi1> to vector<16x16xi1>
      %12 = vector.broadcast %cst : f32 to vector<16x16xf32>
      %13 = arith.select %11, %7, %12 : vector<16x16xi1>, vector<16x16xf32>
      %cst_10 = arith.constant dense<0x7F800000> : vector<16xf32>
      %14 = vector.multi_reduction <minimumf>, %13, %cst_10 [1] : vector<16x16xf32> to vector<16xf32>
      %15 = vector.shape_cast %14 : vector<16xf32> to vector<16x1xf32>
      %16 = vector.broadcast %arg4 : i32 to vector<16x1xi32>
      %17 = arith.cmpi eq, %3, %16 : vector<16x1xi32>
      %18 = vector.shape_cast %17 : vector<16x1xi1> to vector<16x1xi1>
      %19 = vector.broadcast %18 : vector<16x1xi1> to vector<16x16xi1>
      %20 = vector.broadcast %cst : f32 to vector<16x16xf32>
      %21 = arith.select %19, %7, %20 : vector<16x16xi1>, vector<16x16xf32>
      %cst_11 = arith.constant dense<0x7F800000> : vector<16xf32>
      %22 = vector.multi_reduction <minimumf>, %21, %cst_11 [0] : vector<16x16xf32> to vector<16xf32>
      %23 = vector.shape_cast %22 : vector<16xf32> to vector<1x16xf32>
      %24 = vector.broadcast %15 : vector<16x1xf32> to vector<16x16xf32>
      %25 = vector.broadcast %23 : vector<1x16xf32> to vector<16x16xf32>
      %26 = arith.addf %24, %25 : vector<16x16xf32>
      %27 = arith.minimumf %7, %26 : vector<16x16xf32>
      %c0_12 = arith.constant 0 : index
      %c0_13 = arith.constant 0 : index
      %28 = vector.load %arg3[%c0_12, %c0_13] : memref<16x16xf32, #tpu.memory_space<vmem>>, vector<16x16xf32>
      tpu.vector_store %arg3[%c0_12, %c0_13], %27 {strides = array<i32>} : memref<16x16xf32, #tpu.memory_space<vmem>>, vector<16x16xf32>,
    }
    %c16_i32_3 = arith.constant 16 : i32
    %c0_4 = arith.constant 0 : index
    %c0_5 = arith.constant 0 : index
    %5 = vector.load %arg3[%c0_4, %c0_5] : memref<16x16xf32, #tpu.memory_space<vmem>>, vector<16x16xf32>
    %c0_6 = arith.constant 0 : index
    %c0_7 = arith.constant 0 : index
    %6 = vector.load %arg2[%c0_6, %c0_7] : memref<16x16xf32, #tpu.memory_space<vmem>>, vector<16x16xf32>
    tpu.vector_store %arg2[%c0_6, %c0_7], %5 {strides = array<i32>} : memref<16x16xf32, #tpu.memory_space<vmem>>, vector<16x16xf32>,
    return
  }
  func.func @transform_0(%arg0: i32) -> (i32, i32) {
    %c0_i32 = arith.constant 0 : i32
    %c0_i32_0 = arith.constant 0 : i32
    %c0_i32_1 = arith.constant 0 : i32
    return %c0_i32, %c0_i32_0 : i32, i32
  }
  func.func @transform_1(%arg0: i32) -> (i32, i32) {
    %c0_i32 = arith.constant 0 : i32
    %c0_i32_0 = arith.constant 0 : i32
    %c0_i32_1 = arith.constant 0 : i32
    return %c0_i32, %c0_i32_0 : i32, i32
  }
}

</mosaic_0001>

<bundles_post_ra>
// kernel: tpu_custom_call.1
= control target key start
LH: loop header
LB: loop body
LE: loop exit
PB: predicated region body
PF: predicated region fallthrough
CT: control target
= control target key end

     0   :  { %6 = vsyncpa [#allocation4], 0  ;;  %s233_s0 = inlined_call_operand.hbm [shape: f32[16,16], index: 0, kind: input, shape index: {}]   ;;  %s234_s1 = inlined_call_operand.hbm [shape: f32[16,16], index: 1, kind: output, shape index: {}]  }
   0x1   :  { %7 = vsyncpa [#allocation5], 0  ;;  %s170_s6 = smov [#allocation3]   ;;  %s114_s10 = scalar_lea.hbm %s233_s0, 256 }
   0x2   :  { %s13_s7 = sshll.u32 %s170_s6, 4  ;;  %p115_p0 = scmp.ne.s32.totalorder %s233_s0, %s114_s10  ;;  %s14_s7 = int_to_ptr.vmem [resolvable:$true] %s13_s7 }
   0x3   :  { %p118_p1 = scmp.lt.u32.totalorder %s114_s10, %s233_s0 }
   0x5   :  { %p120_p2 = pnand %p118_p1, %p115_p0 }
   0x7   :  { %123 = shalt.err (!%p120_p2)
}
   0x8   :  { %s124_s15 = scalar_lea.vmem %s14_s7, 256  ;;  %p129_p4 = scmp.lt.s32.totalorder %s14_s7, %s14_s7 }
   0x9   :  { %p125_p3 = scmp.ne.s32.totalorder %s14_s7, %s124_s15  ;;  %p130_p5 = scmp.lt.s32.totalorder %s124_s15, %s124_s15 }
   0xb   :  { %p131_p6 = por %p130_p5, %p129_p4 }
   0xd   :  { %p132_p7 = pnand %p131_p6, %p125_p3 }
   0xf   :  { %135 = shalt.err (!%p132_p7)
}
  0x10   :  { %s171_s16 = smov 128   ;;  %s172_s17 = smov 8  }
  0x11   :  { %19 = dma.hbm_to_vmem [thread:$0]  %s233_s0, 256, %s14_s7, [#allocation4], %s171_s16, %s171_s16, %s172_s17  }
  0x12   :  { %162 = dma.done.wait [#allocation4], 256  }
  0x13   :  { %163 = vsyncadd [#allocation4], 4294967040  ;;  %v28_v0 = vlaneseq  ;;  %vm25_vm0 = vcmask 130048   ;;  %v23_v4 = vld [vmem:[#allocation3] sm:$0xff]  ;;  %v24_v5 = vld [vmem:[#allocation3 + $0x8] sm:$0xff]  ;;  %s201_s20 = smov 0  }
  0x14   :  { %26 = vst.msk [vmem:[#allocation2] sm:$0xff] %vm25_vm0, %v23_v4  ;;  %27 = vst.msk [vmem:[#allocation2 + $0x8] sm:$0xff] %vm25_vm0, %v24_v5 }
  0x15   :  { %v29_v1 = vand.u32 127, %v28_v0  ;;  %v31_v2 = vshrl.u32 %v28_v0, 7 }
  0x17   :  { %v32_v3 = vadd.s32 8, %v31_v2 }
  0x18 LB: > { %v41_v8 = vstv %s168_s20  ;;  %s38_s20 = sadd.s32 1, %s168_s20   ;;  %s168_s20 = sphi %s201_s20, %s38_s20  }
  0x19   : > { %vm42_vm1 = vcmp.eq.s32.totalorder %v29_v1, %v41_v8  ;;  %vm53_vm2 = vcmp.eq.s32.totalorder %v31_v2, %v41_v8  ;;  %vm54_vm3 = vcmp.eq.s32.totalorder %v32_v3, %v41_v8  ;;  %p35_p8 = scmp.ge.s32.totalorder %s38_s20, 16  }
  0x1a   :  { %s173_s0 = smov (%p35_p8), [#allocation6]  }
  0x1b   : > { %v39_v6 = vld [vmem:[#allocation2] sm:$0xff]  ;;  %v40_v7 = vld [vmem:[#allocation2 + $0x8] sm:$0xff]  ;;  %s85_s21 = sshll.u32 (%p35_p8), %s173_s0, 4  ;;  %s86_s21 = int_to_ptr.vmem [resolvable:$true] %s85_s21 }
  0x1c   : > { %v45_v9 = vsel %vm42_vm1, %v39_v6, 1e+09  ;;  %v46_v10 = vsel %vm42_vm1, %v40_v7, 1e+09  ;;  %v59_v13 = vsel %vm53_vm2, %v39_v6, 1e+09  ;;  %p141_p10 = scmp.lt.s32.totalorder (%p35_p8), %s86_s21, %s86_s21 }
  0x1d   : > { %v47_v11 = vsel %vm25_vm0, %v45_v9, inf  ;;  %v50_v12 = vsel %vm25_vm0, %v46_v10, inf  ;;  %v60_v14 = vsel %vm54_vm3, %v40_v7, 1e+09  ;;  %v61_v15 = vsel %vm25_vm0, %v59_v13, inf  ;;  %s136_s22 = scalar_lea.vmem (%p35_p8), %s86_s21, 256 }
  0x1e   : > { %48 = vmin.xlane.f32.xlu0 %v47_v11  ;;  %v62_v16 = vsel %vm25_vm0, %v60_v14, inf  ;;  %p137_p9 = scmp.ne.s32.totalorder (%p35_p8), %s86_s21, %s136_s22  ;;  %p142_p11 = scmp.lt.s32.totalorder (%p35_p8), %s136_s22, %s136_s22 }
  0x1f   : > { %v63_v17 = vmin.f32 %v61_v15, %v62_v16 }
  0x20   :  { %p143_p12 = por (%p35_p8), %p142_p11, %p141_p10 }
  0x21   : > { %v64_v18 = vrot.slane %v63_v17, 4 }
  0x22   : > { %51 = vmin.xlane.f32.xlu0 %v50_v12  ;;  %p144_p13 = pnand (%p35_p8), %p143_p12, %p137_p9 }
  0x23   : > { %v65_v19 = vmin.f32 %v63_v17, %v64_v18 }
  0x25   : > { %v66_v20 = vrot.slane %v65_v19, 2 }
  0x27   : > { %v67_v21 = vmin.f32 %v65_v19, %v66_v20 }
  0x29   : > { %v68_v22 = vrot.slane %v67_v21, 1 }
  0x2b   : > { %v69_v23 = vmin.f32 %v67_v21, %v68_v22 }
  0xab   : > { %v49_v24 = vpop.xlane.xlu0 %48 }
  0xac   : > { %v70_v25 = vadd.f32 %v69_v23, %v49_v24 }
  0xae   : > { %v72_v26 = vmin.f32 %v39_v6, %v70_v25  ;;  %37 = sbr.rel (!%p35_p8) target bundleno = 24 (0x18), region = 35 }
  0xaf   : > { %v52_v27 = vpop.xlane.xlu0 %51 }
  0xb0   : > { %74 = vst.msk [vmem:[#allocation2] sm:$0xff] %vm25_vm0, %v72_v26  ;;  %v71_v28 = vadd.f32 %v69_v23, %v52_v27 }
  0xb2   : > { %v73_v29 = vmin.f32 %v40_v7, %v71_v28 }
  0xb4   : > { %75 = vst.msk [vmem:[#allocation2 + $0x8] sm:$0xff] %vm25_vm0, %v73_v29 }
  0xb7   :  { %v76_v30 = vld [vmem:[#allocation2] sm:$0xff] }
  0xb8   :  { %78 = vst.msk [vmem:[#allocation6] sm:$0xff] %vm25_vm0, %v76_v30 }
  0xbb   :  { %v77_v31 = vld [vmem:[#allocation2 + $0x8] sm:$0xff] }
  0xbc   :  { %79 = vst.msk [vmem:[#allocation6 + $0x8] sm:$0xff] %vm25_vm0, %v77_v31 }
  0xbd   :  { %147 = shalt.err (!%p144_p13)
}
  0xbe   :  { %s148_s25 = scalar_lea.hbm %s234_s1, 256 }
  0xbf   :  { %p149_p0 = scmp.ne.s32.totalorder %s234_s1, %s148_s25  ;;  %p152_p1 = scmp.lt.u32.totalorder %s148_s25, %s234_s1 }
  0xc1   :  { %p154_p2 = pnand %p152_p1, %p149_p0 }
  0xc3   :  { %157 = shalt.err (!%p154_p2)
}
  0xc4   :  { %91 = dma.vmem_to_hbm [thread:$0]  %s86_s21, 256, %s234_s1, [#allocation5], %s171_s16, %s171_s16, %s172_s17  }
  0xc5   :  { %164 = dma.done.wait [#allocation5], 256  }
  0xc6   :  { %165 = vsyncadd [#allocation5], 4294967040 }
  0xc7   :  { %95 = vsyncpa [#allocation4], 1 }
  0xc8   :  { %96 = vsyncpa [#allocation5], 1 }

</bundles_post_ra>
